<compile_context>
chip_gen: v6e
topology: v6e:2x2x1
jax: 0.10.0
libtpu: 0.0.40
codegen_flags: <defaults>
</compile_context>

<pallas_src>
import math

import jax
import jax.numpy as jnp
from jax.experimental import pallas as pl
from jax.experimental.pallas import tpu as pltpu


def _make_pos_compat_kernel(Kd):
    def kernel(x_ref, w_ref, o_ref):
        # x_ref : (HB, G, D)     h replicated per head; HB = H*B, index h*B+b
        # w_ref : (HB, 2*Kd, D)  per-(head) [Wq | Wk], transposed, replicated per batch
        # o_ref : (HB, G, G)     compat tiles, one per (head, batch) pair
        x = x_ref[...]
        w = w_ref[...]

        # (1) One batched projection: [Q | K] for every (head, batch) pair.
        #     Contract last dims of both operands, single leading batch dim.
        p = jnp.einsum("ngd,ncd->ngc", x, w,
                       preferred_element_type=jnp.float32)      # (HB, G, 2*Kd)

        # Per-head Q and K columns are adjacent -> two contiguous slices total.
        q = p[:, :, :Kd]                                         # (HB, G, Kd)
        k = p[:, :, Kd:]                                         # (HB, G, Kd)

        # (2) One batched QK^T over the fused (head*batch) axis; contracting
        #     the last dims of both operands avoids any explicit transpose.
        compat = jnp.einsum("ngk,nmk->ngm", q, k,
                            preferred_element_type=jnp.float32)  # (HB, G, G)

        # Single store of the full result block.
        o_ref[...] = compat.astype(o_ref.dtype)

    return kernel


def multi_head_pos_compat(h, w_query, w_key):
    """h: (B, G, D); w_query/w_key: (H, D, Kd) -> (H, B, G, G)."""
    B, G, D = h.shape
    H, D_w, Kd = w_query.shape
    assert D == D_w
    HB = H * B

    # Wrapper-side layout plumbing (tiny, one broadcast + one concat in XLA).
    #   x_rep[h*B + b] = h[b]                         (HB, G, D)
    #   w_rep[h*B + b] = [Wq_h | Wk_h]^T              (HB, 2*Kd, D)
    x_rep = jnp.broadcast_to(h[None], (H, B, G, D)).reshape(HB, G, D)
    w_qk = jnp.concatenate([w_query, w_key], axis=-1)            # (H, D, 2*Kd)
    w_qk_t = jnp.swapaxes(w_qk, 1, 2)                            # (H, 2*Kd, D)
    w_rep = jnp.broadcast_to(w_qk_t[:, None], (H, B, 2 * Kd, D)).reshape(
        HB, 2 * Kd, D)

    flops = 2 * HB * G * D * (2 * Kd) + 2 * HB * G * G * Kd
    bytes_accessed = 4 * (x_rep.size + w_rep.size + HB * G * G)
    cost = pl.CostEstimate(flops=flops, transcendentals=0,
                           bytes_accessed=bytes_accessed)

    out = pl.pallas_call(
        _make_pos_compat_kernel(Kd),
        out_shape=jax.ShapeDtypeStruct((HB, G, G), jnp.float32),
        grid=(1,),
        in_specs=[
            pl.BlockSpec((HB, G, D), lambda i: (0, 0, 0)),
            pl.BlockSpec((HB, 2 * Kd, D), lambda i: (0, 0, 0)),
        ],
        out_specs=pl.BlockSpec((HB, G, G), lambda i: (0, 0, 0)),
        compiler_params=pltpu.CompilerParams(
            dimension_semantics=("arbitrary",)),
        cost_estimate=cost,
    )(x_rep, w_rep)

    # (HB, G, G) with HB = h*B + b (head-major) -> pure reshape, no transpose.
    return out.reshape(H, B, G, G)


def reference(h, w_query, w_key):
    # Pure-JAX reference mirroring the PyTorch forward exactly.
    B, G, D = h.shape
    H = w_query.shape[0]
    posflat = h.reshape(-1, D)                                 # (B*G, D)
    Q = jnp.matmul(posflat, w_query).reshape(H, B, G, -1)      # (H, B, G, Kd)
    K = jnp.matmul(posflat, w_key).reshape(H, B, G, -1)        # (H, B, G, Kd)
    return jnp.matmul(Q, jnp.swapaxes(K, 2, 3))                # (H, B, G, G)


if __name__ == "__main__":
    # Small shapes consistent with the module's forward.
    n_heads = 4
    input_dim = 16
    embed_dim = 32
    key_dim = embed_dim // n_heads      # val_dim = key_dim = 8
    batch = 2
    graph_size = 8

    key = jax.random.PRNGKey(0)
    k_h, k_q, k_k = jax.random.split(key, 3)

    # Deterministic parameter init matching nn.Parameter uniform(-stdv, stdv)
    # with stdv = 1/sqrt(key_dim) (param.size(-1) == key_dim).
    stdv = 1.0 / math.sqrt(key_dim)
    W_query = jax.random.uniform(
        k_q, (n_heads, input_dim, key_dim), jnp.float32, -stdv, stdv)
    W_key = jax.random.uniform(
        k_k, (n_heads, input_dim, key_dim), jnp.float32, -stdv, stdv)

    h = jax.random.normal(k_h, (batch, graph_size, input_dim), jnp.float32)

    out = multi_head_pos_compat(h, W_query, W_key)
    out = jax.block_until_ready(out)

    ref = reference(h, W_query, W_key)
    assert out.shape == (n_heads, batch, graph_size, graph_size)
    assert jnp.allclose(out, ref, atol=1e-4, rtol=1e-4), "mismatch vs reference"

    print("KERNEL_OK")
</pallas_src>

<mosaic_0001>
module attributes {stable_mosaic.version = 11 : i64} {
  func.func @kernel(%arg0: i32, %arg1: memref<8x8x16xf32, #tpu.memory_space<vmem>>, %arg2: memref<8x16x16xf32, #tpu.memory_space<vmem>>, %arg3: memref<8x8x8xf32, #tpu.memory_space<vmem>>) attributes {dimension_semantics = [#tpu.dimension_semantics<arbitrary>], iteration_bounds = array<i64: 1>, scalar_prefetch = 0 : i64, scratch_operands = 0 : i64, tpu.core_type = #tpu.core_type<tc>, window_params = [{pipeline_mode = #tpu.pipeline_mode<synchronous>, transform_indices = @transform_0, window_bounds = array<i64: 8, 8, 16>}, {pipeline_mode = #tpu.pipeline_mode<synchronous>, transform_indices = @transform_1, window_bounds = array<i64: 8, 16, 16>}, {pipeline_mode = #tpu.pipeline_mode<synchronous>, transform_indices = @transform_2, window_bounds = array<i64: 8, 8, 8>}]} {
    %c0 = arith.constant 0 : index
    %c0_0 = arith.constant 0 : index
    %c0_1 = arith.constant 0 : index
    %0 = vector.load %arg1[%c0, %c0_0, %c0_1] : memref<8x8x16xf32, #tpu.memory_space<vmem>>, vector<8x8x16xf32>
    %c0_2 = arith.constant 0 : index
    %c0_3 = arith.constant 0 : index
    %c0_4 = arith.constant 0 : index
    %1 = vector.load %arg2[%c0_2, %c0_3, %c0_4] : memref<8x16x16xf32, #tpu.memory_space<vmem>>, vector<8x16x16xf32>
    "tpu.trace_start"() <{level = 10 : i32, message = "ngd,ncd->ngc"}> : () -> ()
    %cst = arith.constant dense<0.000000e+00> : vector<8x8x16xf32>
    %2 = tpu.matmul %0, %1, %cst {dimension_numbers = #tpu.dot_dimension_numbers<[2], [2], [1], [1], [0, 0, 0, 1, 1, 1], [0], [0]>} : vector<8x8x16xf32>, vector<8x16x16xf32>, vector<8x8x16xf32> -> vector<8x8x16xf32>
    "tpu.trace_stop"() : () -> ()
    %3 = vector.extract_strided_slice %2 {offsets = [0, 0, 0], sizes = [8, 8, 8], strides = [1, 1, 1]} : vector<8x8x16xf32> to vector<8x8x8xf32>
    %4 = vector.extract_strided_slice %2 {offsets = [0, 0, 8], sizes = [8, 8, 8], strides = [1, 1, 1]} : vector<8x8x16xf32> to vector<8x8x8xf32>
    "tpu.trace_start"() <{level = 10 : i32, message = "ngk,nmk->ngm"}> : () -> ()
    %cst_5 = arith.constant dense<0.000000e+00> : vector<8x8x8xf32>
    %5 = tpu.matmul %3, %4, %cst_5 {dimension_numbers = #tpu.dot_dimension_numbers<[2], [2], [1], [1], [0, 0, 0, 1, 1, 1], [0], [0]>} : vector<8x8x8xf32>, vector<8x8x8xf32>, vector<8x8x8xf32> -> vector<8x8x8xf32>
    "tpu.trace_stop"() : () -> ()
    %c0_6 = arith.constant 0 : index
    %c0_7 = arith.constant 0 : index
    %c0_8 = arith.constant 0 : index
    %6 = vector.load %arg3[%c0_6, %c0_7, %c0_8] : memref<8x8x8xf32, #tpu.memory_space<vmem>>, vector<8x8x8xf32>
    tpu.vector_store %arg3[%c0_6, %c0_7, %c0_8], %5 {strides = array<i32>} : memref<8x8x8xf32, #tpu.memory_space<vmem>>, vector<8x8x8xf32>,
    return
  }
  func.func @transform_0(%arg0: i32) -> (i32, i32, i32) {
    %c0_i32 = arith.constant 0 : i32
    %c0_i32_0 = arith.constant 0 : i32
    %c0_i32_1 = arith.constant 0 : i32
    %c0_i32_2 = arith.constant 0 : i32
    return %c0_i32, %c0_i32_0, %c0_i32_1 : i32, i32, i32
  }
  func.func @transform_1(%arg0: i32) -> (i32, i32, i32) {
    %c0_i32 = arith.constant 0 : i32
    %c0_i32_0 = arith.constant 0 : i32
    %c0_i32_1 = arith.constant 0 : i32
    %c0_i32_2 = arith.constant 0 : i32
    return %c0_i32, %c0_i32_0, %c0_i32_1 : i32, i32, i32
  }
  func.func @transform_2(%arg0: i32) -> (i32, i32, i32) {
    %c0_i32 = arith.constant 0 : i32
    %c0_i32_0 = arith.constant 0 : i32
    %c0_i32_1 = arith.constant 0 : i32
    %c0_i32_2 = arith.constant 0 : i32
    return %c0_i32, %c0_i32_0, %c0_i32_1 : i32, i32, i32
  }
}

</mosaic_0001>

<bundles_post_ra>
// kernel: tpu_custom_call.1
= control target key start
LH: loop header
LB: loop body
LE: loop exit
PB: predicated region body
PF: predicated region fallthrough
CT: control target
= control target key end

     0   :  { %7 = vsyncpa [#allocation3], 0  ;;  %s1735_s0 = inlined_call_operand.hbm [shape: f32[8,8,16], index: 0, kind: input, shape index: {}]   ;;  %s1736_s1 = inlined_call_operand.hbm [shape: f32[8,16,16], index: 1, kind: input, shape index: {}]   ;;  %s1737_s2 = inlined_call_operand.hbm [shape: f32[8,8,8], index: 2, kind: output, shape index: {}]  }
   0x1   :  { %8 = vsyncpa [#allocation6], 0 }
   0x2   :  { %9 = vsyncpa [#allocation4], 0  ;;  %s1590_s9 = smov [#allocation2]  }
   0x3   :  { %s15_s10 = sshll.u32 %s1590_s9, 4  ;;  %s16_s10 = int_to_ptr.vmem [resolvable:$true] %s15_s10 }
   0x4   :  { %s1532_s11 = scalar_lea.vmem %s16_s10, 1024  ;;  %p1537_p1 = scmp.lt.s32.totalorder %s16_s10, %s16_s10 }
   0x5   :  { %p1533_p0 = scmp.ne.s32.totalorder %s16_s10, %s1532_s11  ;;  %p1538_p2 = scmp.lt.s32.totalorder %s1532_s11, %s1532_s11 }
   0x7   :  { %p1539_p3 = por %p1538_p2, %p1537_p1 }
   0x9   :  { %p1540_p4 = pnand %p1539_p3, %p1533_p0 }
   0xb   :  { %1543 = shalt.err (!%p1540_p4)
}
   0xc   :  { %s1591_s12 = smov 128   ;;  %s1592_s13 = smov 8  }
   0xd   :  { %21 = dma.hbm_to_vmem [thread:$0]  %s1735_s0, 1024, %s16_s10, [#allocation3], %s1591_s12, %s1591_s12, %s1592_s13  }
   0xe   :  { %s1593_s16 = smov [#allocation5]  }
   0xf   :  { %s27_s17 = sshll.u32 %s1593_s16, 4  ;;  %s28_s17 = int_to_ptr.vmem [resolvable:$true] %s27_s17 }
  0x10   :  { %s1552_s18 = scalar_lea.vmem %s28_s17, 2048  ;;  %p1557_p6 = scmp.lt.s32.totalorder %s28_s17, %s28_s17 }
  0x11   :  { %p1553_p5 = scmp.ne.s32.totalorder %s28_s17, %s1552_s18  ;;  %p1558_p7 = scmp.lt.s32.totalorder %s1552_s18, %s1552_s18 }
  0x13   :  { %p1559_p8 = por %p1558_p7, %p1557_p6 }
  0x15   :  { %p1560_p9 = pnand %p1559_p8, %p1553_p5 }
  0x17   :  { %1563 = shalt.err (!%p1560_p9)
}
  0x18   :  { %33 = dma.hbm_to_vmem [thread:$0]  %s1736_s1, 2048, %s28_s17, [#allocation6], %s1591_s12, %s1591_s12, %s1592_s13  }
  0x19   :  { %1584 = dma.done.wait [#allocation3], 1024  }
  0x1a   :  { %1585 = vsyncadd [#allocation3], 4294966272 }
  0x1b   :  { %1586 = dma.done.wait [#allocation6], 2048  }
  0x1c   :  { %1587 = vsyncadd [#allocation6], 4294965248  ;;  %v1594_v0 = vmov 0.0   ;;  %vm1595_vm0 = vmmov 0   ;;  %vm64_vm1 = vcmask 130048   ;;  %v49_v1 = vld [vmem:[#allocation5 + $0x8] sm:$0xff] }
  0x1d   :  { %1420 = vmatprep.subr.mxu0 %v1594_v0  ;;  %1427 = vmatprep.subr.mxu1 %v1594_v0  ;;  %v51_v2 = vld [vmem:[#allocation5 + $0x18] sm:$0xff]  ;;  %v48_v3 = vld [vmem:[#allocation5] sm:$0xff]  ;;  %v50_v4 = vld [vmem:[#allocation5 + $0x10] sm:$0xff]  ;;  %s1596_s0 = smov 120   ;;  %vm700_vm2 = vcmask 64512   ;;  %s1597_s1 = smov [#allocation7]  }
  0x1e   :  { %1424 = vmatprep.mubr.msk.f32.mxu0 %vm1595_vm0, %v1594_v0  ;;  %1431 = vmatprep.mubr.msk.f32.mxu1 %vm1595_vm0, %v1594_v0  ;;  %v40_v5 = vld [vmem:[#allocation2] sm:$0xff]  ;;  %v41_v6 = vld [vmem:[#allocation2 + $0x8] sm:$0xff]  ;;  %v55_v8 = vld [vmem:[#allocation5 + $0x38] sm:$0xff]  ;;  %s1327_s21 = sshll.u32 %s1597_s1, 4  ;;  %s1328_s21 = int_to_ptr.vmem [resolvable:$true] %s1327_s21 }
  0x1f   :  { %1421 = vmatpush3.xpose.msk.msra.mxu0 %vm64_vm1, %v49_v1  ;;  %1428 = vmatpush3.xpose.msk.msra.mxu1 %vm64_vm1, %v51_v2  ;;  %v53_v7 = vld [vmem:[#allocation5 + $0x28] sm:$0xff]  ;;  %v52_v9 = vld [vmem:[#allocation5 + $0x20] sm:$0xff]  ;;  %v54_v10 = vld [vmem:[#allocation5 + $0x30] sm:$0xff]  ;;  %s1564_s22 = scalar_lea.vmem %s1328_s21, 1024  ;;  %p1569_p11 = scmp.lt.s32.totalorder %s1328_s21, %s1328_s21 }
  0x20   :  { %1422 = vmatprep.subr.mxu0 %v1594_v0  ;;  %1429 = vmatprep.subr.mxu1 %v1594_v0  ;;  %v42_v11 = vld [vmem:[#allocation2 + $0x10] sm:$0xff]  ;;  %v43_v12 = vld [vmem:[#allocation2 + $0x18] sm:$0xff]  ;;  %v57_v13 = vld [vmem:[#allocation5 + $0x48] sm:$0xff]  ;;  %p1565_p10 = scmp.ne.s32.totalorder %s1328_s21, %s1564_s22  ;;  %p1570_p12 = scmp.lt.s32.totalorder %s1564_s22, %s1564_s22 }
  0x21   :  { %v59_v14 = vld [vmem:[#allocation5 + $0x58] sm:$0xff]  ;;  %v56_v15 = vld [vmem:[#allocation5 + $0x40] sm:$0xff]  ;;  %v58_v16 = vld [vmem:[#allocation5 + $0x50] sm:$0xff] }
  0x22   :  { %v44_v17 = vld [vmem:[#allocation2 + $0x20] sm:$0xff]  ;;  %v45_v18 = vld [vmem:[#allocation2 + $0x28] sm:$0xff]  ;;  %v63_v20 = vld [vmem:[#allocation5 + $0x78] sm:$0xff]  ;;  %p1571_p13 = por %p1570_p12, %p1569_p11 }
  0x23   :  { %1423 = vmatpush3.xpose.msk.msra.mxu0 %vm64_vm1, %v48_v3  ;;  %1430 = vmatpush3.xpose.msk.msra.mxu1 %vm64_vm1, %v50_v4  ;;  %v61_v19 = vld [vmem:[#allocation5 + $0x68] sm:$0xff]  ;;  %v60_v21 = vld [vmem:[#allocation5 + $0x60] sm:$0xff]  ;;  %v62_v22 = vld [vmem:[#allocation5 + $0x70] sm:$0xff] }
  0x24   :  { %1434 = vmatprep.subr.mxu0 %v1594_v0  ;;  %1441 = vmatprep.subr.mxu1 %v1594_v0  ;;  %v46_v23 = vld [vmem:[#allocation2 + $0x30] sm:$0xff]  ;;  %v47_v24 = vld [vmem:[#allocation2 + $0x38] sm:$0xff]  ;;  %p1572_p0 = pnand %p1571_p13, %p1565_p10 }
  0x26   :  { %1425 = vmatmul.mubr.msk.f32.vlgmr.msra.gmra.mxu0 %vm64_vm1, %v40_v5  ;;  %1432 = vmatmul.mubr.msk.f32.vlgmr.msra.gmra.mxu1 %vm64_vm1, %v41_v6 }
  0x27   :  { %1435 = vmatpush3.xpose.msk.msra.mxu0 %vm64_vm1, %v53_v7  ;;  %1442 = vmatpush3.xpose.msk.msra.mxu1 %vm64_vm1, %v55_v8 }
  0x28   :  { %1436 = vmatprep.subr.mxu0 %v1594_v0  ;;  %1443 = vmatprep.subr.mxu1 %v1594_v0 }
  0x29   :  { %1438 = vmatprep.mubr.msk.f32.mxu0 %vm1595_vm0, %v1594_v0  ;;  %1445 = vmatprep.mubr.msk.f32.mxu1 %vm1595_vm0, %v1594_v0 }
  0x2b   :  { %1437 = vmatpush3.xpose.msk.msra.mxu0 %vm64_vm1, %v52_v9  ;;  %1444 = vmatpush3.xpose.msk.msra.mxu1 %vm64_vm1, %v54_v10 }
  0x2c   :  { %1448 = vmatprep.subr.mxu0 %v1594_v0  ;;  %1455 = vmatprep.subr.mxu1 %v1594_v0 }
  0x2e   :  { %1439 = vmatmul.mubr.msk.f32.vlgmr.msra.gmra.mxu0 %vm64_vm1, %v42_v11  ;;  %1446 = vmatmul.mubr.msk.f32.vlgmr.msra.gmra.mxu1 %vm64_vm1, %v43_v12 }
  0x2f   :  { %1449 = vmatpush3.xpose.msk.msra.mxu0 %vm64_vm1, %v57_v13  ;;  %1456 = vmatpush3.xpose.msk.msra.mxu1 %vm64_vm1, %v59_v14 }
  0x30   :  { %1450 = vmatprep.subr.mxu0 %v1594_v0  ;;  %1457 = vmatprep.subr.mxu1 %v1594_v0 }
  0x31   :  { %1452 = vmatprep.mubr.msk.f32.mxu0 %vm1595_vm0, %v1594_v0  ;;  %1459 = vmatprep.mubr.msk.f32.mxu1 %vm1595_vm0, %v1594_v0 }
  0x33   :  { %1451 = vmatpush3.xpose.msk.msra.mxu0 %vm64_vm1, %v56_v15  ;;  %1458 = vmatpush3.xpose.msk.msra.mxu1 %vm64_vm1, %v58_v16 }
  0x34   :  { %1462 = vmatprep.subr.mxu0 %v1594_v0  ;;  %1469 = vmatprep.subr.mxu1 %v1594_v0 }
  0x36   :  { %1453 = vmatmul.mubr.msk.f32.vlgmr.msra.gmra.mxu0 %vm64_vm1, %v44_v17  ;;  %1460 = vmatmul.mubr.msk.f32.vlgmr.msra.gmra.mxu1 %vm64_vm1, %v45_v18 }
  0x37   :  { %1463 = vmatpush3.xpose.msk.msra.mxu0 %vm64_vm1, %v61_v19  ;;  %1470 = vmatpush3.xpose.msk.msra.mxu1 %vm64_vm1, %v63_v20 }
  0x38   :  { %1464 = vmatprep.subr.mxu0 %v1594_v0  ;;  %1471 = vmatprep.subr.mxu1 %v1594_v0 }
  0x39   :  { %1466 = vmatprep.mubr.msk.f32.mxu0 %vm1595_vm0, %v1594_v0  ;;  %1473 = vmatprep.mubr.msk.f32.mxu1 %vm1595_vm0, %v1594_v0 }
  0x3b   :  { %1465 = vmatpush3.xpose.msk.msra.mxu0 %vm64_vm1, %v60_v21  ;;  %1472 = vmatpush3.xpose.msk.msra.mxu1 %vm64_vm1, %v62_v22 }
  0x3c   :  { %1476 = vmatprep.subr.mxu0 %v1594_v0  ;;  %1481 = vmatprep.subr.mxu1 %v1594_v0 }
  0x3e   :  { %1467 = vmatmul.mubr.msk.f32.vlgmr.msra.gmra.mxu0 %vm64_vm1, %v46_v23  ;;  %1474 = vmatmul.mubr.msk.f32.vlgmr.msra.gmra.mxu1 %vm64_vm1, %v47_v24 }
  0x3f   :  { %1478 = vmatprep.mubr.msk.f32.mxu0 %vm1595_vm0, %v1594_v0  ;;  %1483 = vmatprep.mubr.msk.f32.mxu1 %vm1595_vm0, %v1594_v0 }
  0xe6   :  { %v140_v25 = vpop.f32.mrf.mxu0  ;;  %v219_v26 = vpop.f32.mrf.mxu1 }
  0xe7   :  { %698 = vrot.lane.b32.xlu0 %v140_v25, %s1596_s0 }
  0xe8   :  { %v1426_v27 = vpop.f32.mrf.mxu0  ;;  %v1433_v28 = vpop.f32.mrf.mxu1 }
  0xeb   :  { %776 = vrot.lane.b32.xlu0 %v219_v26, %s1596_s0 }
  0xee   :  { %v298_v29 = vpop.f32.mrf.mxu0  ;;  %v377_v30 = vpop.f32.mrf.mxu1 }
  0xef   :  { %853 = vrot.lane.b32.xlu1 %v298_v29, %s1596_s0 }
  0xf0   :  { %v1440_v31 = vpop.f32.mrf.mxu0  ;;  %v1447_v32 = vpop.f32.mrf.mxu1 }
  0xf3   :  { %930 = vrot.lane.b32.xlu1 %v377_v30, %s1596_s0 }
  0xf6   :  { %v456_v33 = vpop.f32.mrf.mxu0  ;;  %v535_v34 = vpop.f32.mrf.mxu1 }
  0xf7   :  { %1084 = vrot.lane.b32.xlu1 %v535_v34, %s1596_s0  ;;  %1007 = vrot.lane.b32.xlu0 %v456_v33, %s1596_s0 }
  0xf8   :  { %v1454_v35 = vpop.f32.mrf.mxu0  ;;  %v1461_v36 = vpop.f32.mrf.mxu1 }
  0xfe   :  { %v614_v37 = vpop.f32.mrf.mxu0  ;;  %v693_v38 = vpop.f32.mrf.mxu1 }
  0xff   :  { %1238 = vrot.lane.b32.xlu1 %v693_v38, %s1596_s0  ;;  %1161 = vrot.lane.b32.xlu0 %v614_v37, %s1596_s0 }
 0x100   :  { %v1468_v39 = vpop.f32.mrf.mxu0  ;;  %v1475_v40 = vpop.f32.mrf.mxu1 }
 0x159   :  { %v699_v41 = vpop.permute.xlu0 %698 }
 0x15a   :  { %1477 = vmatpush3.xpose.msk.msra.mxu0 %vm700_vm2, %v699_v41 }
 0x15b   :  { %1486 = vmatprep.subr.mxu0 %v1594_v0 }
 0x15d   :  { %1479 = vmatmul.mubr.msk.f32.vlgmr.msra.gmra.mxu0 %vm700_vm2, %v140_v25  ;;  %v777_v42 = vpop.permute.xlu0 %776 }
 0x15e   :  { %1482 = vmatpush3.xpose.msk.msra.mxu1 %vm700_vm2, %v777_v42  ;;  %1488 = vmatprep.mubr.msk.f32.mxu0 %vm1595_vm0, %v1594_v0 }
 0x15f   :  { %1491 = vmatprep.subr.mxu1 %v1594_v0 }
 0x161   :  { %1484 = vmatmul.mubr.msk.f32.vlgmr.msra.gmra.mxu1 %vm700_vm2, %v219_v26  ;;  %v854_v43 = vpop.permute.xlu1 %853 }
 0x162   :  { %1487 = vmatpush3.xpose.msk.msra.mxu0 %vm700_vm2, %v854_v43  ;;  %1493 = vmatprep.mubr.msk.f32.mxu1 %vm1595_vm0, %v1594_v0 }
 0x163   :  { %1496 = vmatprep.subr.mxu0 %v1594_v0 }
 0x165   :  { %1489 = vmatmul.mubr.msk.f32.vlgmr.msra.gmra.mxu0 %vm700_vm2, %v298_v29  ;;  %v931_v44 = vpop.permute.xlu1 %930 }
 0x166   :  { %1492 = vmatpush3.xpose.msk.msra.mxu1 %vm700_vm2, %v931_v44  ;;  %1498 = vmatprep.mubr.msk.f32.mxu0 %vm1595_vm0, %v1594_v0 }
 0x167   :  { %1501 = vmatprep.subr.mxu1 %v1594_v0 }
 0x169   :  { %1494 = vmatmul.mubr.msk.f32.vlgmr.msra.gmra.mxu1 %vm700_vm2, %v377_v30  ;;  %v1085_v45 = vpop.permute.xlu1 %1084  ;;  %v1008_v46 = vpop.permute.xlu0 %1007 }
 0x16a   :  { %1497 = vmatpush3.xpose.msk.msra.mxu0 %vm700_vm2, %v1008_v46  ;;  %1502 = vmatpush3.xpose.msk.msra.mxu1 %vm700_vm2, %v1085_v45 }
 0x16b   :  { %1503 = vmatprep.mubr.msk.f32.mxu1 %vm1595_vm0, %v1594_v0  ;;  %1511 = vmatprep.subr.mxu1 %v1594_v0 }
 0x16c   :  { %1506 = vmatprep.subr.mxu0 %v1594_v0 }
 0x16d   :  { %1499 = vmatmul.mubr.msk.f32.vlgmr.msra.gmra.mxu0 %vm700_vm2, %v456_v33  ;;  %1504 = vmatmul.mubr.msk.f32.vlgmr.msra.gmra.mxu1 %vm700_vm2, %v535_v34 }
 0x16e   :  { %1508 = vmatprep.mubr.msk.f32.mxu0 %vm1595_vm0, %v1594_v0  ;;  %1513 = vmatprep.mubr.msk.f32.mxu1 %vm1595_vm0, %v1594_v0 }
 0x171   :  { %v1239_v47 = vpop.permute.xlu1 %1238  ;;  %v1162_v48 = vpop.permute.xlu0 %1161 }
 0x172   :  { %1507 = vmatpush3.xpose.msk.msra.mxu0 %vm700_vm2, %v1162_v48  ;;  %1512 = vmatpush3.xpose.msk.msra.mxu1 %vm700_vm2, %v1239_v47 }
 0x175   :  { %1509 = vmatmul.mubr.msk.f32.vlgmr.msra.gmra.mxu0 %vm700_vm2, %v614_v37  ;;  %1514 = vmatmul.mubr.msk.f32.vlgmr.msra.gmra.mxu1 %vm700_vm2, %v693_v38 }
 0x21d   :  { %v771_v49 = vpop.f32.mrf.mxu0 }
 0x21e   :  { %1314 = vst.msk [vmem:[#allocation7] sm:$0xff] %vm700_vm2, %v771_v49 }
 0x21f   :  { %v1480_v50 = vpop.f32.mrf.mxu0 }
 0x221   :  { %v848_v51 = vpop.f32.mrf.mxu1 }
 0x222   :  { %1315 = vst.msk [vmem:[#allocation7 + $0x8] sm:$0xff] %vm700_vm2, %v848_v51 }
 0x223   :  { %v1485_v52 = vpop.f32.mrf.mxu1 }
 0x225   :  { %v925_v53 = vpop.f32.mrf.mxu0 }
 0x226   :  { %1316 = vst.msk [vmem:[#allocation7 + $0x10] sm:$0xff] %vm700_vm2, %v925_v53 }
 0x227   :  { %v1490_v54 = vpop.f32.mrf.mxu0 }
 0x229   :  { %v1002_v55 = vpop.f32.mrf.mxu1 }
 0x22a   :  { %1317 = vst.msk [vmem:[#allocation7 + $0x18] sm:$0xff] %vm700_vm2, %v1002_v55 }
 0x22b   :  { %v1495_v56 = vpop.f32.mrf.mxu1 }
 0x22d   :  { %v1079_v57 = vpop.f32.mrf.mxu0  ;;  %v1156_v58 = vpop.f32.mrf.mxu1 }
 0x22e   :  { %1318 = vst.msk [vmem:[#allocation7 + $0x20] sm:$0xff] %vm700_vm2, %v1079_v57  ;;  %1319 = vst.msk [vmem:[#allocation7 + $0x28] sm:$0xff] %vm700_vm2, %v1156_v58 }
 0x22f   :  { %v1500_v59 = vpop.f32.mrf.mxu0  ;;  %v1505_v60 = vpop.f32.mrf.mxu1 }
 0x235   :  { %v1233_v61 = vpop.f32.mrf.mxu0  ;;  %v1310_v62 = vpop.f32.mrf.mxu1 }
 0x236   :  { %1320 = vst.msk [vmem:[#allocation7 + $0x30] sm:$0xff] %vm700_vm2, %v1233_v61  ;;  %1321 = vst.msk [vmem:[#allocation7 + $0x38] sm:$0xff] %vm700_vm2, %v1310_v62 }
 0x237   :  { %v1510_v63 = vpop.f32.mrf.mxu0  ;;  %v1515_v0 = vpop.f32.mrf.mxu1 }
 0x238   :  { %1575 = shalt.err (!%p1572_p0)
}
 0x239   :  { %1333 = dma.vmem_to_hbm [thread:$0]  %s1328_s21, 1024, %s1737_s2, [#allocation4], %s1591_s12, %s1591_s12, %s1592_s13  }
 0x23a   :  { %1588 = dma.done.wait [#allocation4], 1024  }
 0x23b   :  { %1589 = vsyncadd [#allocation4], 4294966272 }
 0x23c   :  { %1337 = vsyncpa [#allocation3], 1 }
 0x23d   :  { %1338 = vsyncpa [#allocation6], 1 }
 0x23e   :  { %1339 = vsyncpa [#allocation4], 1 }

</bundles_post_ra>
